<compile_context>
chip_gen: v7x
topology: tpu7x:2x2x1
jax: 0.10.0
libtpu: 0.0.40
codegen_flags: <defaults>
</compile_context>

<pallas_src>
import jax
import jax.numpy as jnp
from jax.experimental import pallas as pl
from jax.experimental.pallas import tpu as pltpu


def hloss_kernel(x_ref, o_ref):
    # x_ref: (TB, C) tile of logits, o_ref: (TB, 1) per-row entropy.
    x = x_ref[...].astype(jnp.float32)
    m = jnp.max(x, axis=-1, keepdims=True)            # (TB, 1)
    xm = x - m                                        # (TB, C)
    ex = jnp.exp(xm)                                  # (TB, C)  (EUP)
    s = jnp.sum(ex, axis=-1, keepdims=True)           # (TB, 1)
    sxx = jnp.sum(ex * xm, axis=-1, keepdims=True)    # (TB, 1)
    # H = log(s) - (sum ex*(x-m)) / s  ==  lse - sum softmax(x) * x
    ent = jnp.log(s) - sxx * pl.reciprocal(s, approx=False)
    o_ref[...] = ent.astype(o_ref.dtype)


def _pick_tb(B, C, itemsize):
    """Batch-tile size: big blocks (mem-bound kernel) but keep a few grid steps
    for pipelining / v7x megacore sharding."""
    target_block_bytes = 2 * 1024 * 1024               # ~2 MiB input block
    tb = target_block_bytes // max(1, C * itemsize)
    tb = max(8, min(2048, (tb // 8) * 8))
    b_pad = -(-B // 8) * 8
    tb = min(tb, b_pad)
    # Prefer >= 8 grid steps when the batch is big enough, but never shrink
    # the tile below 128 rows to get there.
    while tb > 128 and -(-b_pad // tb) < 8:
        tb = max(128, (tb // 2) // 8 * 8)
    return max(8, tb)


def _hloss_2d(x, tb=None):
    B, C = x.shape
    if tb is None:
        tb = _pick_tb(B, C, x.dtype.itemsize)
    bp = pl.cdiv(B, tb) * tb
    xp = x if bp == B else jnp.pad(x, ((0, bp - B), (0, 0)))
    out2d = pl.pallas_call(
        hloss_kernel,
        out_shape=jax.ShapeDtypeStruct((bp, 1), jnp.float32),
        grid=(bp // tb,),
        in_specs=[pl.BlockSpec((tb, C), lambda i: (i, 0))],
        out_specs=pl.BlockSpec((tb, 1), lambda i: (i, 0)),
        compiler_params=pltpu.CompilerParams(
            dimension_semantics=("parallel",),
            vmem_limit_bytes=64 * 1024 * 1024,
        ),
    )(xp)
    return out2d[:B, 0]


def hloss(x, dim=1, tb=None):
    """Entropy of softmax over axis `dim` (PyTorch HLoss forward)."""
    x = jnp.asarray(x)
    if x.ndim == 2 and dim in (1, -1):
        return _hloss_2d(x, tb)
    # General N-D case: move class axis last, flatten the rest into "rows".
    xm = jnp.moveaxis(x, dim, -1)
    lead = xm.shape[:-1]
    flat = xm.reshape((-1, xm.shape[-1]))
    return _hloss_2d(flat, tb).reshape(lead)


def hloss_ref(x, dim=1):
    """Pure-JAX reference matching the PyTorch module."""
    p = jax.nn.softmax(x, axis=dim)
    logp = jax.nn.log_softmax(x, axis=dim)
    return -1.0 * jnp.sum(p * logp, axis=dim)


if __name__ == "__main__":
    key = jax.random.PRNGKey(0)
    k1, k2, k3 = jax.random.split(key, 3)

    # 2D (B, C): class axis = dim 1 = last axis.
    x2d = jax.random.normal(k1, (16, 128), dtype=jnp.float32) * 3.0
    out2d = jax.block_until_ready(hloss(x2d))
    ref2d = hloss_ref(x2d)
    assert out2d.shape == (16,)
    assert jnp.allclose(out2d, ref2d, atol=1e-5, rtol=1e-5), (
        f"max abs err = {jnp.max(jnp.abs(out2d - ref2d))}"
    )

    # Ragged batch (exercises wrapper-side padding; no divisibility assert).
    xr = jax.random.normal(k2, (13, 96), dtype=jnp.float32) * 2.0
    outr = jax.block_until_ready(hloss(xr))
    refr = hloss_ref(xr)
    assert outr.shape == (13,)
    assert jnp.allclose(outr, refr, atol=1e-5, rtol=1e-5)

    # 4D (B, C, H, W): softmax over dim=1, like the PyTorch module on conv maps.
    x4d = jax.random.normal(k3, (2, 4, 16, 16), dtype=jnp.float32)
    out4d = jax.block_until_ready(hloss(x4d))
    ref4d = hloss_ref(x4d)
    assert out4d.shape == (2, 16, 16)
    assert jnp.allclose(out4d, ref4d, atol=1e-5, rtol=1e-5)

    # bf16 input: fed as-is, upcast inside the kernel (halves HBM read bytes).
    xbf = x2d.astype(jnp.bfloat16)
    outbf = jax.block_until_ready(hloss(xbf))
    refbf = hloss_ref(xbf.astype(jnp.float32))
    assert jnp.allclose(outbf, refbf, atol=1e-4, rtol=1e-4)

    print("KERNEL_OK")
</pallas_src>

<mosaic_0001>
module attributes {stable_mosaic.version = 11 : i64} {
  func.func @hloss_kernel(%arg0: i32, %arg1: memref<16x128xf32, #tpu.memory_space<vmem>>, %arg2: memref<16x1xf32, #tpu.memory_space<vmem>>) attributes {dimension_semantics = [#tpu.dimension_semantics<parallel>], iteration_bounds = array<i64: 1>, scalar_prefetch = 0 : i64, scratch_operands = 0 : i64, tpu.core_type = #tpu.core_type<tc>, window_params = [{transform_indices = @transform_0, window_bounds = array<i64: 16, 128>}, {transform_indices = @transform_1, window_bounds = array<i64: 16, 1>}]} {
    %c0 = arith.constant 0 : index
    %c0_0 = arith.constant 0 : index
    %0 = vector.load %arg1[%c0, %c0_0] : memref<16x128xf32, #tpu.memory_space<vmem>>, vector<16x128xf32>
    %cst = arith.constant dense<0xFF800000> : vector<16xf32>
    %1 = vector.multi_reduction <maximumf>, %0, %cst [1] : vector<16x128xf32> to vector<16xf32>
    %2 = vector.shape_cast %1 : vector<16xf32> to vector<16x1xf32>
    %3 = vector.broadcast %2 : vector<16x1xf32> to vector<16x128xf32>
    %4 = arith.subf %0, %3 : vector<16x128xf32>
    %5 = math.exp %4 : vector<16x128xf32>
    %cst_1 = arith.constant dense<0.000000e+00> : vector<16xf32>
    %6 = vector.multi_reduction <add>, %5, %cst_1 [1] : vector<16x128xf32> to vector<16xf32>
    %7 = vector.shape_cast %6 : vector<16xf32> to vector<16x1xf32>
    %8 = arith.mulf %5, %4 : vector<16x128xf32>
    %cst_2 = arith.constant dense<0.000000e+00> : vector<16xf32>
    %9 = vector.multi_reduction <add>, %8, %cst_2 [1] : vector<16x128xf32> to vector<16xf32>
    %10 = vector.shape_cast %9 : vector<16xf32> to vector<16x1xf32>
    %11 = math.log %7 : vector<16x1xf32>
    %12 = tpu.reciprocal %7 : vector<16x1xf32> -> vector<16x1xf32>
    %13 = arith.mulf %10, %12 : vector<16x1xf32>
    %14 = arith.subf %11, %13 : vector<16x1xf32>
    %c0_3 = arith.constant 0 : index
    %c0_4 = arith.constant 0 : index
    %15 = vector.load %arg2[%c0_3, %c0_4] : memref<16x1xf32, #tpu.memory_space<vmem>>, vector<16x1xf32>
    tpu.vector_store %arg2[%c0_3, %c0_4], %14 {strides = array<i32>} : memref<16x1xf32, #tpu.memory_space<vmem>>, vector<16x1xf32>,
    return
  }
  func.func @transform_0(%arg0: i32) -> (i32, i32) {
    %c0_i32 = arith.constant 0 : i32
    %c0_i32_0 = arith.constant 0 : i32
    return %arg0, %c0_i32 : i32, i32
  }
  func.func @transform_1(%arg0: i32) -> (i32, i32) {
    %c0_i32 = arith.constant 0 : i32
    %c0_i32_0 = arith.constant 0 : i32
    return %arg0, %c0_i32 : i32, i32
  }
}

</mosaic_0001>

<bundles_post_ra>
// kernel: tpu_custom_call.1
= control target key start
LH: loop header
LB: loop body
LE: loop exit
PB: predicated region body
PF: predicated region fallthrough
CT: control target
= control target key end

     0   :  { %6 = vsyncpa [#allocation3], 0  ;;  %s183_s0 = inlined_call_operand.hbm [shape: f32[16,128], index: 0, kind: input, shape index: {}]   ;;  %s184_s1 = inlined_call_operand.hbm [shape: f32[16,1], index: 1, kind: output, shape index: {}]  }
   0x1   :  { %7 = vsyncpa [#allocation4], 0  ;;  %s139_s6 = smov [#allocation2]   ;;  %s91_s10 = scalar_lea.hbm %s183_s0, 256 }
   0x2   :  { %s13_s7 = sshll.u32 %s139_s6, 4  ;;  %p92_p0 = scmp.ne.s32.totalorder %s183_s0, %s91_s10  ;;  %s14_s7 = int_to_ptr.vmem [resolvable:$true] %s13_s7 }
   0x3   :  { %p95_p1 = scmp.lt.u32.totalorder %s91_s10, %s183_s0 }
   0x5   :  { %p97_p2 = pnand %p95_p1, %p92_p0 }
   0x7   :  { %100 = shalt.err (!%p97_p2)
}
   0x8   :  { %s101_s15 = scalar_lea.vmem %s14_s7, 256  ;;  %p106_p4 = scmp.lt.s32.totalorder %s14_s7, %s14_s7 }
   0x9   :  { %p102_p3 = scmp.ne.s32.totalorder %s14_s7, %s101_s15  ;;  %p107_p5 = scmp.lt.s32.totalorder %s101_s15, %s101_s15 }
   0xb   :  { %p108_p6 = por %p107_p5, %p106_p4 }
   0xd   :  { %p109_p7 = pnand %p108_p6, %p102_p3 }
   0xf   :  { %112 = shalt.err (!%p109_p7)
}
  0x10   :  { %s140_s16 = smov 128   ;;  %s141_s17 = smov 8  }
  0x11   :  { %19 = dma.hbm_to_vmem [thread:$0]  %s183_s0, 256, %s14_s7, [#allocation3], %s140_s16, %s140_s16, %s141_s17  }
  0x12   :  { %135 = dma.done.wait [#allocation3], 256  }
  0x13   :  { %136 = vsyncadd [#allocation3], 4294967040  ;;  %v23_v0 = vld [vmem:[#allocation2] sm:$0xff]  ;;  %v24_v1 = vld [vmem:[#allocation2 + $0x8] sm:$0xff]  ;;  %vm55_vm0 = vcmask 7168   ;;  %s142_s0 = smov [#allocation5]  }
  0x14   :  { %25 = vmax.xlane.f32.xlu0 %v23_v0  ;;  %s63_s20 = sshll.u32 %s142_s0, 4  ;;  %s64_s20 = int_to_ptr.vmem [resolvable:$true] %s63_s20 }
  0x15   :  { %s113_s21 = scalar_lea.vmem %s64_s20, 256  ;;  %p118_p9 = scmp.lt.s32.totalorder %s64_s20, %s64_s20 }
  0x16   :  { %p114_p8 = scmp.ne.s32.totalorder %s64_s20, %s113_s21  ;;  %p119_p10 = scmp.lt.s32.totalorder %s113_s21, %s113_s21 }
  0x18   :  { %27 = vmax.xlane.f32.xlu0 %v24_v1  ;;  %p120_p11 = por %p119_p10, %p118_p9 }
  0x1a   :  { %p121_p12 = pnand %p120_p11, %p114_p8 }
  0xa1   :  { %v26_v2 = vpop.xlane.xlu0 %25 }
  0xa2   :  { %v29_v3 = vsub.f32 %v23_v0, %v26_v2 }
  0xa4   :  { %v31_v4 = vmul.f32 1.442695, %v29_v3 }
  0xa5   :  { %v28_v5 = vpop.xlane.xlu0 %27 }
  0xa6   :  { %79 = vpow2.f32 %v31_v4  ;;  %v30_v6 = vsub.f32 %v24_v1, %v28_v5 }
  0xa8   :  { %v33_v7 = vmul.f32 1.442695, %v30_v6 }
  0xaa   :  { %81 = vpow2.f32 %v33_v7 }
  0xb0   :  { %v80_v8 = vpop.eup %79 }
  0xb1   :  { %35 = vadd.xlane.f32.xlu1 %v80_v8  ;;  %v39_v9 = vmul.f32 %v80_v8, %v29_v3 }
  0xb3   :  { %41 = vadd.xlane.f32.xlu0 %v39_v9 }
  0xb4   :  { %v82_v10 = vpop.eup %81 }
  0xb5   :  { %37 = vadd.xlane.f32.xlu1 %v82_v10  ;;  %v40_v11 = vmul.f32 %v82_v10, %v30_v6 }
  0xb9   :  { %43 = vadd.xlane.f32.xlu1 %v40_v11 }
 0x13e   :  { %v36_v12 = vpop.xlane.xlu1 %35 }
 0x13f   :  { %83 = vlog2.f32 %v36_v12 }
 0x140   :  { %85 = vrcp.f32 %v36_v12  ;;  %v42_v17 = vpop.xlane.xlu0 %41 }
 0x142   :  { %v38_v13 = vpop.xlane.xlu1 %37 }
 0x143   :  { %87 = vlog2.f32 %v38_v13 }
 0x144   :  { %89 = vrcp.f32 %v38_v13 }
 0x146   :  { %v44_v23 = vpop.xlane.xlu1 %43 }
 0x149   :  { %v84_v14 = vpop.eup %83 }
 0x14a   :  { %v86_v15 = vpop.eup %85  ;;  %v46_v16 = vmul.f32 0.6931472, %v84_v14 }
 0x14b   :  { %v51_v18 = vmul.f32 %v86_v15, %v42_v17 }
 0x14d   :  { %v88_v19 = vpop.eup %87  ;;  %v53_v20 = vsub.f32 %v46_v16, %v51_v18 }
 0x14e   :  { %v90_v21 = vpop.eup %89  ;;  %v48_v22 = vmul.f32 0.6931472, %v88_v19 }
 0x14f   :  { %v52_v24 = vmul.f32 %v90_v21, %v44_v23  ;;  %56 = vst.msk [vmem:[#allocation5] sm:$0xff] %vm55_vm0, %v53_v20 }
 0x151   :  { %v54_v25 = vsub.f32 %v48_v22, %v52_v24 }
 0x153   :  { %57 = vst.msk [vmem:[#allocation5 + $0x8] sm:$0xff] %vm55_vm0, %v54_v25 }
 0x154   :  { %124 = shalt.err (!%p121_p12)
}
 0x155   :  { %s125_s24 = scalar_lea.hbm %s184_s1, 256 }
 0x156   :  { %p126_p13 = scmp.ne.s32.totalorder %s184_s1, %s125_s24  ;;  %p129_p0 = scmp.lt.u32.totalorder %s125_s24, %s184_s1 }
 0x158   :  { %p131_p1 = pnand %p129_p0, %p126_p13 }
 0x15a   :  { %134 = shalt.err (!%p131_p1)
}
 0x15b   :  { %69 = dma.vmem_to_hbm [thread:$0]  %s64_s20, 256, %s184_s1, [#allocation4], %s140_s16, %s140_s16, %s141_s17  }
 0x15c   :  { %137 = dma.done.wait [#allocation4], 256  }
 0x15d   :  { %138 = vsyncadd [#allocation4], 4294967040 }
 0x15e   :  { %73 = vsyncpa [#allocation3], 1 }
 0x15f   :  { %74 = vsyncpa [#allocation4], 1 }

</bundles_post_ra>
